<compile_context>
chip_gen: v7x
topology: tpu7x:2x2x1
jax: 0.10.0
libtpu: 0.0.40
codegen_flags: <defaults>
</compile_context>

<pallas_src>
import functools

import jax
import jax.numpy as jnp
from jax.experimental import pallas as pl
from jax.experimental.pallas import tpu as pltpu


# ----------------------------- Pallas kernel -----------------------------

def _mvae_fused_kernel(x_ref, we1_ref, be1_ref, we2_ref, be2_ref,
                       wd1_ref, bd1_ref, wd2_ref, bd2_ref,
                       wp_ref, bp_ref,
                       dec_ref, pred_ref):
    """Fused autoencoders + predictors. All refs are whole arrays in VMEM."""
    x = x_ref[...]            # [B, F, L]
    we1 = we1_ref[...]        # [F, L, GL]
    be1 = be1_ref[...]        # [F, 1, GL]
    we2 = we2_ref[...]        # [F, GL, D]
    be2 = be2_ref[...]        # [F, 1, D]
    wd1 = wd1_ref[...]        # [F, D, GL]
    bd1 = bd1_ref[...]        # [F, 1, GL]
    wd2 = wd2_ref[...]        # [F, GL, L]
    bd2 = bd2_ref[...]        # [F, 1, L]

    n_features = x.shape[1]
    decs, zs = [], []
    # F is small & static -> Python loop unrolls at trace time; the scheduler
    # can interleave the six tiny matmuls of the different features.
    for f in range(n_features):
        xf = x[:, f, :]                                               # [B, L]
        h1 = jnp.maximum(
            jnp.dot(xf, we1[f], preferred_element_type=jnp.float32) + be1[f],
            0.0)                                                      # [B, GL]
        z = jnp.dot(h1, we2[f], preferred_element_type=jnp.float32) + be2[f]
        h2 = jnp.maximum(
            jnp.dot(z, wd1[f], preferred_element_type=jnp.float32) + bd1[f],
            0.0)                                                      # [B, GL]
        dec = jnp.dot(h2, wd2[f], preferred_element_type=jnp.float32) + bd2[f]
        zs.append(z)                                                  # [B, D]
        decs.append(dec)                                              # [B, L]

    # Single lane-dense store of all decoded features.
    dec_ref[...] = jnp.concatenate(decs, axis=-1)                     # [B, F*L]

    # torch.cat(enc, dim=-1) over features == [B, F*D]; kept in-register.
    enc = jnp.concatenate(zs, axis=-1)                                # [B, F*D]
    # All T predictor heads fused in one dot against wp packed as [F*D, T*O].
    pred_ref[...] = (
        jnp.dot(enc, wp_ref[...], preferred_element_type=jnp.float32)
        + bp_ref[...])                                                # [B, T*O]


# ----------------------------- forward wrapper -----------------------------

def modified_autoencoder_forward(x_bfl, params):
    """Forward pass matching ModifiedAutoEncoder.forward.

    x_bfl: [B, F, L]
    returns (decoded [B, F, L], predict [B, T, O])
    """
    B, F, L = x_bfl.shape
    T, FD, O = params["wp"].shape

    # Pack the T predictor heads into one [F*D, T*O] matmul (params are
    # compile-time constants under jit, so this folds away).
    wp_flat = jnp.transpose(params["wp"], (1, 0, 2)).reshape(FD, T * O)
    bp_flat = params["bp"].reshape(1, T * O)

    dec_flat, pred_flat = pl.pallas_call(
        _mvae_fused_kernel,
        out_shape=(
            jax.ShapeDtypeStruct((B, F * L), jnp.float32),
            jax.ShapeDtypeStruct((B, T * O), jnp.float32),
        ),
    )(x_bfl, params["we1"], params["be1"], params["we2"], params["be2"],
      params["wd1"], params["bd1"], params["wd2"], params["bd2"],
      wp_flat, bp_flat)

    decoded = dec_flat.reshape(B, F, L)      # free: contiguous reshape
    predict = pred_flat.reshape(B, T, O)     # free: contiguous reshape
    return decoded, predict


# ----------------------------- parameter setup -----------------------------

def init_params(key, *, n_features, inseqlen, growth, latent_space_dim,
                n_targets, outseqlen):
    L, GL, D = inseqlen, growth * inseqlen, latent_space_dim
    FD, O, F, T = n_features * D, outseqlen, n_features, n_targets

    def uniform(key, shape, fan_in):
        bound = 1.0 / jnp.sqrt(jnp.float32(fan_in))
        return jax.random.uniform(key, shape, jnp.float32, -bound, bound)

    ks = jax.random.split(key, 10)
    params = {
        # encoder: Linear(L, GL) -> ReLU -> Linear(GL, D)
        "we1": uniform(ks[0], (F, L, GL), L),
        "be1": uniform(ks[1], (F, 1, GL), L),
        "we2": uniform(ks[2], (F, GL, D), GL),
        "be2": uniform(ks[3], (F, 1, D), GL),
        # decoder: Linear(D, GL) -> ReLU -> Linear(GL, L)
        "wd1": uniform(ks[4], (F, D, GL), D),
        "bd1": uniform(ks[5], (F, 1, GL), D),
        "wd2": uniform(ks[6], (F, GL, L), GL),
        "bd2": uniform(ks[7], (F, 1, L), GL),
        # predictor: Linear(F*D, O) per target
        "wp": uniform(ks[8], (T, FD, O), FD),
        "bp": uniform(ks[9], (T, 1, O), FD),
    }
    return params


# ----------------------------- reference (pure JAX) -----------------------------

def reference_forward(x_bfl, params):
    B, F, L = x_bfl.shape
    decs, zs = [], []
    for f in range(F):
        x = x_bfl[:, f, :]
        h1 = jnp.maximum(x @ params["we1"][f] + params["be1"][f][0], 0.0)
        z = h1 @ params["we2"][f] + params["be2"][f][0]
        h2 = jnp.maximum(z @ params["wd1"][f] + params["bd1"][f][0], 0.0)
        dec = h2 @ params["wd2"][f] + params["bd2"][f][0]
        zs.append(z)
        decs.append(dec)
    decoded = jnp.stack(decs, axis=1)
    enc_flat = jnp.concatenate(zs, axis=-1)
    preds = [enc_flat @ params["wp"][t] + params["bp"][t][0]
             for t in range(params["wp"].shape[0])]
    predict = jnp.stack(preds, axis=1)
    return decoded, predict


# ----------------------------- main -----------------------------

if __name__ == "__main__":
    cfg = dict(n_features=3, inseqlen=16, growth=2, latent_space_dim=8,
               n_targets=2, outseqlen=8)
    B = 4

    key = jax.random.PRNGKey(0)
    kx, kp = jax.random.split(key)
    x = jax.random.normal(kx, (B, cfg["n_features"], cfg["inseqlen"]),
                          jnp.float32)
    params = init_params(kp, **cfg)

    fwd = jax.jit(functools.partial(modified_autoencoder_forward, params=params))
    decoded, predict = fwd(x)
    jax.block_until_ready((decoded, predict))

    # sanity check against a pure-JAX reference of the same math
    dec_ref, pred_ref = reference_forward(x, params)
    assert decoded.shape == (B, cfg["n_features"], cfg["inseqlen"])
    assert predict.shape == (B, cfg["n_targets"], cfg["outseqlen"])
    assert jnp.allclose(decoded, dec_ref, atol=1e-5, rtol=1e-5)
    assert jnp.allclose(predict, pred_ref, atol=1e-5, rtol=1e-5)

    print("KERNEL_OK")
</pallas_src>

<mosaic_0001>
module attributes {stable_mosaic.version = 11 : i64} {
  func.func @_mvae_fused_kernel(%arg0: memref<4x3x16xf32, #tpu.memory_space<vmem>>, %arg1: memref<3x16x32xf32, #tpu.memory_space<vmem>>, %arg2: memref<3x1x32xf32, #tpu.memory_space<vmem>>, %arg3: memref<3x32x8xf32, #tpu.memory_space<vmem>>, %arg4: memref<3x1x8xf32, #tpu.memory_space<vmem>>, %arg5: memref<3x8x32xf32, #tpu.memory_space<vmem>>, %arg6: memref<3x1x32xf32, #tpu.memory_space<vmem>>, %arg7: memref<3x32x16xf32, #tpu.memory_space<vmem>>, %arg8: memref<3x1x16xf32, #tpu.memory_space<vmem>>, %arg9: memref<24x16xf32, #tpu.memory_space<vmem>>, %arg10: memref<1x16xf32, #tpu.memory_space<vmem>>, %arg11: memref<4x48xf32, #tpu.memory_space<vmem>>, %arg12: memref<4x16xf32, #tpu.memory_space<vmem>>) attributes {dimension_semantics = [], scalar_prefetch = 0 : i64, scratch_operands = 0 : i64, tpu.core_type = #tpu.core_type<tc>} {
    %c0 = arith.constant 0 : index
    %c0_0 = arith.constant 0 : index
    %c0_1 = arith.constant 0 : index
    %0 = vector.load %arg0[%c0, %c0_0, %c0_1] : memref<4x3x16xf32, #tpu.memory_space<vmem>>, vector<4x3x16xf32>
    %c0_2 = arith.constant 0 : index
    %c0_3 = arith.constant 0 : index
    %c0_4 = arith.constant 0 : index
    %1 = vector.load %arg1[%c0_2, %c0_3, %c0_4] : memref<3x16x32xf32, #tpu.memory_space<vmem>>, vector<3x16x32xf32>
    %c0_5 = arith.constant 0 : index
    %c0_6 = arith.constant 0 : index
    %c0_7 = arith.constant 0 : index
    %2 = vector.load %arg2[%c0_5, %c0_6, %c0_7] : memref<3x1x32xf32, #tpu.memory_space<vmem>>, vector<3x1x32xf32>
    %c0_8 = arith.constant 0 : index
    %c0_9 = arith.constant 0 : index
    %c0_10 = arith.constant 0 : index
    %3 = vector.load %arg3[%c0_8, %c0_9, %c0_10] : memref<3x32x8xf32, #tpu.memory_space<vmem>>, vector<3x32x8xf32>
    %c0_11 = arith.constant 0 : index
    %c0_12 = arith.constant 0 : index
    %c0_13 = arith.constant 0 : index
    %4 = vector.load %arg4[%c0_11, %c0_12, %c0_13] : memref<3x1x8xf32, #tpu.memory_space<vmem>>, vector<3x1x8xf32>
    %c0_14 = arith.constant 0 : index
    %c0_15 = arith.constant 0 : index
    %c0_16 = arith.constant 0 : index
    %5 = vector.load %arg5[%c0_14, %c0_15, %c0_16] : memref<3x8x32xf32, #tpu.memory_space<vmem>>, vector<3x8x32xf32>
    %c0_17 = arith.constant 0 : index
    %c0_18 = arith.constant 0 : index
    %c0_19 = arith.constant 0 : index
    %6 = vector.load %arg6[%c0_17, %c0_18, %c0_19] : memref<3x1x32xf32, #tpu.memory_space<vmem>>, vector<3x1x32xf32>
    %c0_20 = arith.constant 0 : index
    %c0_21 = arith.constant 0 : index
    %c0_22 = arith.constant 0 : index
    %7 = vector.load %arg7[%c0_20, %c0_21, %c0_22] : memref<3x32x16xf32, #tpu.memory_space<vmem>>, vector<3x32x16xf32>
    %c0_23 = arith.constant 0 : index
    %c0_24 = arith.constant 0 : index
    %c0_25 = arith.constant 0 : index
    %8 = vector.load %arg8[%c0_23, %c0_24, %c0_25] : memref<3x1x16xf32, #tpu.memory_space<vmem>>, vector<3x1x16xf32>
    %9 = vector.extract_strided_slice %0 {offsets = [0, 0, 0], sizes = [4, 1, 16], strides = [1, 1, 1]} : vector<4x3x16xf32> to vector<4x1x16xf32>
    %10 = vector.shape_cast %9 : vector<4x1x16xf32> to vector<4x16xf32>
    %11 = vector.extract_strided_slice %1 {offsets = [0, 0, 0], sizes = [1, 16, 32], strides = [1, 1, 1]} : vector<3x16x32xf32> to vector<1x16x32xf32>
    %12 = vector.shape_cast %11 : vector<1x16x32xf32> to vector<16x32xf32>
    %cst = arith.constant dense<0.000000e+00> : vector<4x32xf32>
    %13 = tpu.matmul %10, %12, %cst {dimension_numbers = #tpu.dot_dimension_numbers<[1], [0], [0], [1], [0, 0, 1, 1], [], []>} : vector<4x16xf32>, vector<16x32xf32>, vector<4x32xf32> -> vector<4x32xf32>
    %14 = vector.extract_strided_slice %2 {offsets = [0, 0, 0], sizes = [1, 1, 32], strides = [1, 1, 1]} : vector<3x1x32xf32> to vector<1x1x32xf32>
    %15 = vector.shape_cast %14 : vector<1x1x32xf32> to vector<1x32xf32>
    %16 = vector.broadcast %15 : vector<1x32xf32> to vector<4x32xf32>
    %17 = arith.addf %13, %16 : vector<4x32xf32>
    %cst_26 = arith.constant 0.000000e+00 : f32
    %18 = vector.broadcast %cst_26 : f32 to vector<4x32xf32>
    %19 = arith.maximumf %17, %18 : vector<4x32xf32>
    %20 = vector.extract_strided_slice %3 {offsets = [0, 0, 0], sizes = [1, 32, 8], strides = [1, 1, 1]} : vector<3x32x8xf32> to vector<1x32x8xf32>
    %21 = vector.shape_cast %20 : vector<1x32x8xf32> to vector<32x8xf32>
    %cst_27 = arith.constant dense<0.000000e+00> : vector<4x8xf32>
    %22 = tpu.matmul %19, %21, %cst_27 {dimension_numbers = #tpu.dot_dimension_numbers<[1], [0], [0], [1], [0, 0, 1, 1], [], []>} : vector<4x32xf32>, vector<32x8xf32>, vector<4x8xf32> -> vector<4x8xf32>
    %23 = vector.extract_strided_slice %4 {offsets = [0, 0, 0], sizes = [1, 1, 8], strides = [1, 1, 1]} : vector<3x1x8xf32> to vector<1x1x8xf32>
    %24 = vector.shape_cast %23 : vector<1x1x8xf32> to vector<1x8xf32>
    %25 = vector.broadcast %24 : vector<1x8xf32> to vector<4x8xf32>
    %26 = arith.addf %22, %25 : vector<4x8xf32>
    %27 = vector.extract_strided_slice %5 {offsets = [0, 0, 0], sizes = [1, 8, 32], strides = [1, 1, 1]} : vector<3x8x32xf32> to vector<1x8x32xf32>
    %28 = vector.shape_cast %27 : vector<1x8x32xf32> to vector<8x32xf32>
    %cst_28 = arith.constant dense<0.000000e+00> : vector<4x32xf32>
    %29 = tpu.matmul %26, %28, %cst_28 {dimension_numbers = #tpu.dot_dimension_numbers<[1], [0], [0], [1], [0, 0, 1, 1], [], []>} : vector<4x8xf32>, vector<8x32xf32>, vector<4x32xf32> -> vector<4x32xf32>
    %30 = vector.extract_strided_slice %6 {offsets = [0, 0, 0], sizes = [1, 1, 32], strides = [1, 1, 1]} : vector<3x1x32xf32> to vector<1x1x32xf32>
    %31 = vector.shape_cast %30 : vector<1x1x32xf32> to vector<1x32xf32>
    %32 = vector.broadcast %31 : vector<1x32xf32> to vector<4x32xf32>
    %33 = arith.addf %29, %32 : vector<4x32xf32>
    %cst_29 = arith.constant 0.000000e+00 : f32
    %34 = vector.broadcast %cst_29 : f32 to vector<4x32xf32>
    %35 = arith.maximumf %33, %34 : vector<4x32xf32>
    %36 = vector.extract_strided_slice %7 {offsets = [0, 0, 0], sizes = [1, 32, 16], strides = [1, 1, 1]} : vector<3x32x16xf32> to vector<1x32x16xf32>
    %37 = vector.shape_cast %36 : vector<1x32x16xf32> to vector<32x16xf32>
    %cst_30 = arith.constant dense<0.000000e+00> : vector<4x16xf32>
    %38 = tpu.matmul %35, %37, %cst_30 {dimension_numbers = #tpu.dot_dimension_numbers<[1], [0], [0], [1], [0, 0, 1, 1], [], []>} : vector<4x32xf32>, vector<32x16xf32>, vector<4x16xf32> -> vector<4x16xf32>
    %39 = vector.extract_strided_slice %8 {offsets = [0, 0, 0], sizes = [1, 1, 16], strides = [1, 1, 1]} : vector<3x1x16xf32> to vector<1x1x16xf32>
    %40 = vector.shape_cast %39 : vector<1x1x16xf32> to vector<1x16xf32>
    %41 = vector.broadcast %40 : vector<1x16xf32> to vector<4x16xf32>
    %42 = arith.addf %38, %41 : vector<4x16xf32>
    %43 = vector.extract_strided_slice %0 {offsets = [0, 1, 0], sizes = [4, 1, 16], strides = [1, 1, 1]} : vector<4x3x16xf32> to vector<4x1x16xf32>
    %44 = vector.shape_cast %43 : vector<4x1x16xf32> to vector<4x16xf32>
    %45 = vector.extract_strided_slice %1 {offsets = [1, 0, 0], sizes = [1, 16, 32], strides = [1, 1, 1]} : vector<3x16x32xf32> to vector<1x16x32xf32>
    %46 = vector.shape_cast %45 : vector<1x16x32xf32> to vector<16x32xf32>
    %cst_31 = arith.constant dense<0.000000e+00> : vector<4x32xf32>
    %47 = tpu.matmul %44, %46, %cst_31 {dimension_numbers = #tpu.dot_dimension_numbers<[1], [0], [0], [1], [0, 0, 1, 1], [], []>} : vector<4x16xf32>, vector<16x32xf32>, vector<4x32xf32> -> vector<4x32xf32>
    %48 = vector.extract_strided_slice %2 {offsets = [1, 0, 0], sizes = [1, 1, 32], strides = [1, 1, 1]} : vector<3x1x32xf32> to vector<1x1x32xf32>
    %49 = vector.shape_cast %48 : vector<1x1x32xf32> to vector<1x32xf32>
    %50 = vector.broadcast %49 : vector<1x32xf32> to vector<4x32xf32>
    %51 = arith.addf %47, %50 : vector<4x32xf32>
    %cst_32 = arith.constant 0.000000e+00 : f32
    %52 = vector.broadcast %cst_32 : f32 to vector<4x32xf32>
    %53 = arith.maximumf %51, %52 : vector<4x32xf32>
    %54 = vector.extract_strided_slice %3 {offsets = [1, 0, 0], sizes = [1, 32, 8], strides = [1, 1, 1]} : vector<3x32x8xf32> to vector<1x32x8xf32>
    %55 = vector.shape_cast %54 : vector<1x32x8xf32> to vector<32x8xf32>
    %cst_33 = arith.constant dense<0.000000e+00> : vector<4x8xf32>
    %56 = tpu.matmul %53, %55, %cst_33 {dimension_numbers = #tpu.dot_dimension_numbers<[1], [0], [0], [1], [0, 0, 1, 1], [], []>} : vector<4x32xf32>, vector<32x8xf32>, vector<4x8xf32> -> vector<4x8xf32>
    %57 = vector.extract_strided_slice %4 {offsets = [1, 0, 0], sizes = [1, 1, 8], strides = [1, 1, 1]} : vector<3x1x8xf32> to vector<1x1x8xf32>
    %58 = vector.shape_cast %57 : vector<1x1x8xf32> to vector<1x8xf32>
    %59 = vector.broadcast %58 : vector<1x8xf32> to vector<4x8xf32>
    %60 = arith.addf %56, %59 : vector<4x8xf32>
    %61 = vector.extract_strided_slice %5 {offsets = [1, 0, 0], sizes = [1, 8, 32], strides = [1, 1, 1]} : vector<3x8x32xf32> to vector<1x8x32xf32>
    %62 = vector.shape_cast %61 : vector<1x8x32xf32> to vector<8x32xf32>
    %cst_34 = arith.constant dense<0.000000e+00> : vector<4x32xf32>
    %63 = tpu.matmul %60, %62, %cst_34 {dimension_numbers = #tpu.dot_dimension_numbers<[1], [0], [0], [1], [0, 0, 1, 1], [], []>} : vector<4x8xf32>, vector<8x32xf32>, vector<4x32xf32> -> vector<4x32xf32>
    %64 = vector.extract_strided_slice %6 {offsets = [1, 0, 0], sizes = [1, 1, 32], strides = [1, 1, 1]} : vector<3x1x32xf32> to vector<1x1x32xf32>
    %65 = vector.shape_cast %64 : vector<1x1x32xf32> to vector<1x32xf32>
    %66 = vector.broadcast %65 : vector<1x32xf32> to vector<4x32xf32>
    %67 = arith.addf %63, %66 : vector<4x32xf32>
    %cst_35 = arith.constant 0.000000e+00 : f32
    %68 = vector.broadcast %cst_35 : f32 to vector<4x32xf32>
    %69 = arith.maximumf %67, %68 : vector<4x32xf32>
    %70 = vector.extract_strided_slice %7 {offsets = [1, 0, 0], sizes = [1, 32, 16], strides = [1, 1, 1]} : vector<3x32x16xf32> to vector<1x32x16xf32>
    %71 = vector.shape_cast %70 : vector<1x32x16xf32> to vector<32x16xf32>
    %cst_36 = arith.constant dense<0.000000e+00> : vector<4x16xf32>
    %72 = tpu.matmul %69, %71, %cst_36 {dimension_numbers = #tpu.dot_dimension_numbers<[1], [0], [0], [1], [0, 0, 1, 1], [], []>} : vector<4x32xf32>, vector<32x16xf32>, vector<4x16xf32> -> vector<4x16xf32>
    %73 = vector.extract_strided_slice %8 {offsets = [1, 0, 0], sizes = [1, 1, 16], strides = [1, 1, 1]} : vector<3x1x16xf32> to vector<1x1x16xf32>
    %74 = vector.shape_cast %73 : vector<1x1x16xf32> to vector<1x16xf32>
    %75 = vector.broadcast %74 : vector<1x16xf32> to vector<4x16xf32>
    %76 = arith.addf %72, %75 : vector<4x16xf32>
    %77 = vector.extract_strided_slice %0 {offsets = [0, 2, 0], sizes = [4, 1, 16], strides = [1, 1, 1]} : vector<4x3x16xf32> to vector<4x1x16xf32>
    %78 = vector.shape_cast %77 : vector<4x1x16xf32> to vector<4x16xf32>
    %79 = vector.extract_strided_slice %1 {offsets = [2, 0, 0], sizes = [1, 16, 32], strides = [1, 1, 1]} : vector<3x16x32xf32> to vector<1x16x32xf32>
    %80 = vector.shape_cast %79 : vector<1x16x32xf32> to vector<16x32xf32>
    %cst_37 = arith.constant dense<0.000000e+00> : vector<4x32xf32>
    %81 = tpu.matmul %78, %80, %cst_37 {dimension_numbers = #tpu.dot_dimension_numbers<[1], [0], [0], [1], [0, 0, 1, 1], [], []>} : vector<4x16xf32>, vector<16x32xf32>, vector<4x32xf32> -> vector<4x32xf32>
    %82 = vector.extract_strided_slice %2 {offsets = [2, 0, 0], sizes = [1, 1, 32], strides = [1, 1, 1]} : vector<3x1x32xf32> to vector<1x1x32xf32>
    %83 = vector.shape_cast %82 : vector<1x1x32xf32> to vector<1x32xf32>
    %84 = vector.broadcast %83 : vector<1x32xf32> to vector<4x32xf32>
    %85 = arith.addf %81, %84 : vector<4x32xf32>
    %cst_38 = arith.constant 0.000000e+00 : f32
    %86 = vector.broadcast %cst_38 : f32 to vector<4x32xf32>
    %87 = arith.maximumf %85, %86 : vector<4x32xf32>
    %88 = vector.extract_strided_slice %3 {offsets = [2, 0, 0], sizes = [1, 32, 8], strides = [1, 1, 1]} : vector<3x32x8xf32> to vector<1x32x8xf32>
    %89 = vector.shape_cast %88 : vector<1x32x8xf32> to vector<32x8xf32>
    %cst_39 = arith.constant dense<0.000000e+00> : vector<4x8xf32>
    %90 = tpu.matmul %87, %89, %cst_39 {dimension_numbers = #tpu.dot_dimension_numbers<[1], [0], [0], [1], [0, 0, 1, 1], [], []>} : vector<4x32xf32>, vector<32x8xf32>, vector<4x8xf32> -> vector<4x8xf32>
    %91 = vector.extract_strided_slice %4 {offsets = [2, 0, 0], sizes = [1, 1, 8], strides = [1, 1, 1]} : vector<3x1x8xf32> to vector<1x1x8xf32>
    %92 = vector.shape_cast %91 : vector<1x1x8xf32> to vector<1x8xf32>
    %93 = vector.broadcast %92 : vector<1x8xf32> to vector<4x8xf32>
    %94 = arith.addf %90, %93 : vector<4x8xf32>
    %95 = vector.extract_strided_slice %5 {offsets = [2, 0, 0], sizes = [1, 8, 32], strides = [1, 1, 1]} : vector<3x8x32xf32> to vector<1x8x32xf32>
    %96 = vector.shape_cast %95 : vector<1x8x32xf32> to vector<8x32xf32>
    %cst_40 = arith.constant dense<0.000000e+00> : vector<4x32xf32>
    %97 = tpu.matmul %94, %96, %cst_40 {dimension_numbers = #tpu.dot_dimension_numbers<[1], [0], [0], [1], [0, 0, 1, 1], [], []>} : vector<4x8xf32>, vector<8x32xf32>, vector<4x32xf32> -> vector<4x32xf32>
    %98 = vector.extract_strided_slice %6 {offsets = [2, 0, 0], sizes = [1, 1, 32], strides = [1, 1, 1]} : vector<3x1x32xf32> to vector<1x1x32xf32>
    %99 = vector.shape_cast %98 : vector<1x1x32xf32> to vector<1x32xf32>
    %100 = vector.broadcast %99 : vector<1x32xf32> to vector<4x32xf32>
    %101 = arith.addf %97, %100 : vector<4x32xf32>
    %cst_41 = arith.constant 0.000000e+00 : f32
    %102 = vector.broadcast %cst_41 : f32 to vector<4x32xf32>
    %103 = arith.maximumf %101, %102 : vector<4x32xf32>
    %104 = vector.extract_strided_slice %7 {offsets = [2, 0, 0], sizes = [1, 32, 16], strides = [1, 1, 1]} : vector<3x32x16xf32> to vector<1x32x16xf32>
    %105 = vector.shape_cast %104 : vector<1x32x16xf32> to vector<32x16xf32>
    %cst_42 = arith.constant dense<0.000000e+00> : vector<4x16xf32>
    %106 = tpu.matmul %103, %105, %cst_42 {dimension_numbers = #tpu.dot_dimension_numbers<[1], [0], [0], [1], [0, 0, 1, 1], [], []>} : vector<4x32xf32>, vector<32x16xf32>, vector<4x16xf32> -> vector<4x16xf32>
    %107 = vector.extract_strided_slice %8 {offsets = [2, 0, 0], sizes = [1, 1, 16], strides = [1, 1, 1]} : vector<3x1x16xf32> to vector<1x1x16xf32>
    %108 = vector.shape_cast %107 : vector<1x1x16xf32> to vector<1x16xf32>
    %109 = vector.broadcast %108 : vector<1x16xf32> to vector<4x16xf32>
    %110 = arith.addf %106, %109 : vector<4x16xf32>
    %111 = tpu.concatenate %42, %76, %110 in 1 : vector<4x16xf32>, vector<4x16xf32>, vector<4x16xf32> -> vector<4x48xf32>
    %c0_43 = arith.constant 0 : index
    %c0_44 = arith.constant 0 : index
    %112 = vector.load %arg11[%c0_43, %c0_44] : memref<4x48xf32, #tpu.memory_space<vmem>>, vector<4x48xf32>
    tpu.vector_store %arg11[%c0_43, %c0_44], %111 {strides = array<i32>} : memref<4x48xf32, #tpu.memory_space<vmem>>, vector<4x48xf32>,
    %113 = tpu.concatenate %26, %60, %94 in 1 : vector<4x8xf32>, vector<4x8xf32>, vector<4x8xf32> -> vector<4x24xf32>
    %c0_45 = arith.constant 0 : index
    %c0_46 = arith.constant 0 : index
    %114 = vector.load %arg9[%c0_45, %c0_46] : memref<24x16xf32, #tpu.memory_space<vmem>>, vector<24x16xf32>
    %cst_47 = arith.constant dense<0.000000e+00> : vector<4x16xf32>
    %115 = tpu.matmul %113, %114, %cst_47 {dimension_numbers = #tpu.dot_dimension_numbers<[1], [0], [0], [1], [0, 0, 1, 1], [], []>} : vector<4x24xf32>, vector<24x16xf32>, vector<4x16xf32> -> vector<4x16xf32>
    %c0_48 = arith.constant 0 : index
    %c0_49 = arith.constant 0 : index
    %116 = vector.load %arg10[%c0_48, %c0_49] : memref<1x16xf32, #tpu.memory_space<vmem>>, vector<1x16xf32>
    %117 = vector.broadcast %116 : vector<1x16xf32> to vector<4x16xf32>
    %118 = arith.addf %115, %117 : vector<4x16xf32>
    %c0_50 = arith.constant 0 : index
    %c0_51 = arith.constant 0 : index
    %119 = vector.load %arg12[%c0_50, %c0_51] : memref<4x16xf32, #tpu.memory_space<vmem>>, vector<4x16xf32>
    tpu.vector_store %arg12[%c0_50, %c0_51], %118 {strides = array<i32>} : memref<4x16xf32, #tpu.memory_space<vmem>>, vector<4x16xf32>,
    return
  }
}

</mosaic_0001>

<bundles_post_ra>
// kernel: modified_autoencoder_forward.1
= control target key start
LH: loop header
LB: loop body
LE: loop exit
PB: predicated region body
PF: predicated region fallthrough
CT: control target
= control target key end

     0   :  { %18 = vsyncpa [#allocation3], 0  ;;  %s1900_s0 = inlined_call_operand.vmem [shape: f32[4,3,16], index: 0, kind: input, shape index: {}]   ;;  %s1901_s1 = inlined_call_operand.vmem [shape: f32[3,16,32], index: 1, kind: input, shape index: {}]   ;;  %s1902_s2 = inlined_call_operand.vmem [shape: f32[3,1,32], index: 2, kind: input, shape index: {}]   ;;  %s1903_s3 = inlined_call_operand.hbm [shape: f32[3,32,8], index: 3, kind: input, shape index: {}]   ;;  %s1904_s4 = inlined_call_operand.vmem [shape: f32[3,1,8], index: 4, kind: input, shape index: {}]   ;;  %s1905_s5 = inlined_call_operand.hbm [shape: f32[3,8,32], index: 5, kind: input, shape index: {}]   ;;  %s1906_s6 = inlined_call_operand.vmem [shape: f32[3,1,32], index: 6, kind: input, shape index: {}]   ;;  %s1907_s7 = inlined_call_operand.hbm [shape: f32[3,32,16], index: 7, kind: input, shape index: {}]   ;;  %s1908_s8 = inlined_call_operand.vmem [shape: f32[3,1,16], index: 8, kind: input, shape index: {}]   ;;  %s1909_s9 = inlined_call_operand.hbm [shape: f32[24,16], index: 9, kind: input, shape index: {}]   ;;  %s1910_s10 = inlined_call_operand.vmem [shape: f32[1,16], index: 10, kind: input, shape index: {}]   ;;  %s1911_s11 = inlined_call_operand.vmem [shape: f32[4,48], index: 11, kind: output, shape index: {0}]   ;;  %s1912_s12 = inlined_call_operand.vmem [shape: f32[4,16], index: 12, kind: output, shape index: {1}]  }
   0x1   :  { %19 = vsyncpa [#allocation5], 0 }
   0x2   :  { %20 = vsyncpa [#allocation8], 0  ;;  %s1579_s21 = smov [#allocation4]   ;;  %s1580_s23 = smov [#allocation2]  }
   0x3   :  { %s46_s22 = sshll.u32 %s1579_s21, 4  ;;  %s32_s24 = sshll.u32 %s1580_s23, 4  ;;  %s47_s22 = int_to_ptr.vmem [resolvable:$true] %s46_s22  ;;  %s1655_s24 = int_to_ptr.vmem [resolvable:$true] %s32_s24 }
   0x4   :  { %s1485_s27 = scalar_lea.hbm %s1905_s5, 384 }
   0x5   :  { %p1486_p0 = scmp.ne.s32.totalorder %s1905_s5, %s1485_s27  ;;  %p1489_p1 = scmp.lt.u32.totalorder %s1485_s27, %s1905_s5 }
   0x7   :  { %p1491_p2 = pnand %p1489_p1, %p1486_p0 }
   0x9   :  { %1494 = shalt.err (!%p1491_p2)
}
   0xa   :  { %s1495_s14 = scalar_lea.vmem %s47_s22, 384  ;;  %p1500_p4 = scmp.lt.s32.totalorder %s47_s22, %s47_s22 }
   0xb   :  { %p1496_p3 = scmp.ne.s32.totalorder %s47_s22, %s1495_s14  ;;  %p1501_p5 = scmp.lt.s32.totalorder %s1495_s14, %s1495_s14 }
   0xd   :  { %p1502_p6 = por %p1501_p5, %p1500_p4 }
   0xf   :  { %p1503_p7 = pnand %p1502_p6, %p1496_p3 }
  0x11   :  { %1506 = shalt.err (!%p1503_p7)
}
  0x12   :  { %s1581_s15 = smov 128   ;;  %s1582_s16 = smov 8  }
  0x13   :  { %52 = dma.hbm_to_vmem [thread:$0]  %s1905_s5, 384, %s47_s22, [#allocation5], %s1581_s15, %s1581_s15, %s1582_s16  }
  0x14   :  { %s1507_s21 = scalar_lea.hbm %s1903_s3, 1536 }
  0x15   :  { %p1508_p8 = scmp.ne.s32.totalorder %s1903_s3, %s1507_s21  ;;  %p1511_p9 = scmp.lt.u32.totalorder %s1507_s21, %s1903_s3 }
  0x17   :  { %p1513_p10 = pnand %p1511_p9, %p1508_p8 }
  0x19   :  { %1516 = shalt.err (!%p1513_p10)
}
  0x1a   :  { %s1517_s28 = scalar_lea.vmem %s1655_s24, 1536  ;;  %p1522_p12 = scmp.lt.s32.totalorder %s1655_s24, %s1655_s24 }
  0x1b   :  { %p1518_p11 = scmp.ne.s32.totalorder %s1655_s24, %s1517_s28  ;;  %p1523_p13 = scmp.lt.s32.totalorder %s1517_s28, %s1517_s28 }
  0x1d   :  { %p1524_p0 = por %p1523_p13, %p1522_p12 }
  0x1f   :  { %p1525_p1 = pnand %p1524_p0, %p1518_p11 }
  0x21   :  { %1528 = shalt.err (!%p1525_p1)
}
  0x22   :  { %38 = dma.hbm_to_vmem [thread:$0]  %s1903_s3, 1536, %s1655_s24, [#allocation3], %s1581_s15, %s1581_s15, %s1582_s16  }
  0x23   :  { %s1583_s29 = smov [#allocation6]   ;;  %s1584_s13 = smov [#allocation7]  }
  0x24   :  { %s60_s30 = sshll.u32 %s1583_s29, 4  ;;  %s74_s14 = sshll.u32 %s1584_s13, 4  ;;  %s61_s30 = int_to_ptr.vmem [resolvable:$true] %s60_s30  ;;  %s1692_s14 = int_to_ptr.vmem [resolvable:$true] %s74_s14 }
  0x25   :  { %s1529_s19 = scalar_lea.hbm %s1907_s7, 1536 }
  0x26   :  { %p1530_p2 = scmp.ne.s32.totalorder %s1907_s7, %s1529_s19  ;;  %p1533_p3 = scmp.lt.u32.totalorder %s1529_s19, %s1907_s7 }
  0x28   :  { %p1535_p4 = pnand %p1533_p3, %p1530_p2 }
  0x2a   :  { %1538 = shalt.err (!%p1535_p4)
}
  0x2b   :  { %s1539_s3 = scalar_lea.vmem %s61_s30, 1536  ;;  %p1544_p6 = scmp.lt.s32.totalorder %s61_s30, %s61_s30 }
  0x2c   :  { %p1540_p5 = scmp.ne.s32.totalorder %s61_s30, %s1539_s3  ;;  %p1545_p7 = scmp.lt.s32.totalorder %s1539_s3, %s1539_s3 }
  0x2e   :  { %p1546_p8 = por %p1545_p7, %p1544_p6 }
  0x30   :  { %p1547_p9 = pnand %p1546_p8, %p1540_p5 }
  0x32   :  { %1550 = shalt.err (!%p1547_p9)
}
  0x33   :  { %66 = dma.hbm_to_vmem [thread:$0]  %s1907_s7, 1536, %s61_s30, [#allocation5], %s1581_s15, %s1581_s15, %s1582_s16  }
  0x34   :  { %s1551_s5 = scalar_lea.hbm %s1909_s9, 384 }
  0x35   :  { %p1552_p10 = scmp.ne.s32.totalorder %s1909_s9, %s1551_s5  ;;  %p1555_p11 = scmp.lt.u32.totalorder %s1551_s5, %s1909_s9 }
  0x37   :  { %p1557_p12 = pnand %p1555_p11, %p1552_p10 }
  0x39   :  { %1560 = shalt.err (!%p1557_p12)
}
  0x3a   :  { %s1561_s18 = scalar_lea.vmem %s1692_s14, 384  ;;  %p1566_p0 = scmp.lt.s32.totalorder %s1692_s14, %s1692_s14 }
  0x3b   :  { %p1562_p13 = scmp.ne.s32.totalorder %s1692_s14, %s1561_s18  ;;  %p1567_p1 = scmp.lt.s32.totalorder %s1561_s18, %s1561_s18 }
  0x3d   :  { %p1568_p2 = por %p1567_p1, %p1566_p0 }
  0x3f   :  { %p1569_p3 = pnand %p1568_p2, %p1562_p13 }
  0x41   :  { %1572 = shalt.err (!%p1569_p3)
}
  0x42   :  { %80 = dma.hbm_to_vmem [thread:$0]  %s1909_s9, 384, %s1692_s14, [#allocation8], %s1581_s15, %s1581_s15, %s1582_s16  }
  0x43   :  { %1573 = dma.done.wait [#allocation3], 1536  }
  0x44   :  { %1574 = vsyncadd [#allocation3], 4294965760 }
  0x45   :  { %1575 = dma.done.wait [#allocation5], 1920  }
  0x46   :  { %1576 = vsyncadd [#allocation5], 4294965376 }
  0x47   :  { %1577 = dma.done.wait [#allocation8], 384  }
  0x48   :  { %1578 = vsyncadd [#allocation8], 4294966912  ;;  %v1585_v0 = vmov 0.0|0.0   ;;  %vm1586_vm0 = vmmov 0   ;;  %v1587_v1 = vmov 0.0   ;;  %v99_v2 = vld [vmem:[%s1901_s1] sm:$0xff] }
  0x49   :  { %1426 = vmatprep.subr.bf16.mxu0 %v1585_v0  ;;  %1319 = vmatprep.mubr.msk.f32.mxu0 %vm1586_vm0, %v1587_v1  ;;  %v100_v3 = vld [vmem:[%s1901_s1 + $0x8] sm:$0xff]  ;;  %v1744_v4 = vld [vmem:[%s1900_s0] sm:$0x7]  ;;  %vm155_vm1 = vcmask 1041409   ;;  %v1749_v6 = vld [vmem:[%s1900_s0 + $0x4] sm:$0x7] }
  0x4a   :  { %1429 = vmatprep.subr.bf16.mxu1 %v1585_v0  ;;  %1330 = vmatprep.mubr.msk.f32.mxu1 %vm1586_vm0, %v1587_v1  ;;  %v1427_v5 = vpack.c.bf16 %v100_v3, %v99_v2  ;;  %v1754_v7 = vld [vmem:[%s1900_s0 + $0x8] sm:$0x7]  ;;  %v1759_v8 = vld [vmem:[%s1900_s0 + $0xc] sm:$0x7]  ;;  %v154_v9 = vrot.slane %v1749_v6, 7  ;;  %vm158_vm2 = vcmask 1042434  }
  0x4b   :  { %v157_v10 = vrot.slane %v1754_v7, 6  ;;  %v160_v11 = vrot.slane %v1759_v8, 5  ;;  %v108_v12 = vld [vmem:[#allocation2] sm:$0xff]  ;;  %v109_v13 = vld [vmem:[#allocation2 + $0x8] sm:$0xff]  ;;  %vm161_vm3 = vcmask 1043459   ;;  %vm163_vm4 = vcmask 130048  }
  0x4c   :  { %1428 = vmatpush3.bf16.msra.mxu0 %v1427_v5  ;;  %v1430_v14 = vpack.c.bf16 %v109_v13, %v108_v12  ;;  %v156_v15 = vsel %vm155_vm1, %v154_v9, %v1744_v4  ;;  %v110_v18 = vld [vmem:[#allocation2 + $0x10] sm:$0xff]  ;;  %v111_v19 = vld [vmem:[#allocation2 + $0x18] sm:$0xff]  ;;  %v123_v21 = vld [vmem:[#allocation4] sm:$0xff]  ;;  %v483_v22 = vrot.slane %v1744_v4, 1  ;;  %v485_v26 = vrot.slane %v1754_v7, 7  ;;  %s1588_s27 = smov 16  }
  0x4d   :  { %1333 = vmatprep.subr.mxu0 %v1587_v1  ;;  %v159_v16 = vsel %vm158_vm2, %v157_v10, %v156_v15  ;;  %v1433_v20 = vpack.c.bf16 %v111_v19, %v110_v18  ;;  %v1240_v23 = vld [vmem:[%s1902_s2] ss:$0 sm:$0xff]  ;;  %v101_v24 = vld [vmem:[%s1901_s1 + $0x10] sm:$0xff]  ;;  %v102_v25 = vld [vmem:[%s1901_s1 + $0x18] sm:$0xff]  ;;  %vm243_vm5 = vcmask 261120   ;;  %v487_v32 = vrot.slane %v1759_v8, 6 }
  0x4e   :  { %1431 = vmatpush3.bf16.msra.mxu1 %v1430_v14  ;;  %v162_v17 = vsel %vm161_vm3, %v160_v11, %v159_v16  ;;  %v484_v28 = vsel %vm155_vm1, %v1749_v6, %v483_v22  ;;  %v1442_v31 = vpack.c.bf16 %v102_v25, %v101_v24  ;;  %v112_v36 = vld [vmem:[#allocation2 + $0x20] sm:$0xff]  ;;  %v113_v37 = vld [vmem:[#allocation2 + $0x28] sm:$0xff]  ;;  %v114_v39 = vld [vmem:[#allocation2 + $0x30] sm:$0xff]  ;;  %v806_v45 = vrot.slane %v1744_v4, 2  ;;  %s1589_s7 = smov 32  }
  0x4f   :  { %1432 = vmatprep.subr.bf16.mxu1 %v1585_v0  ;;  %1320 = vmatmul.mubr.msk.f32.vlgmr.msra.gmra.mrb[0].mxu0 %vm163_vm4, %v162_v17  ;;  %v486_v34 = vsel %vm158_vm2, %v485_v26, %v484_v28  ;;  %v1445_v38 = vpack.c.bf16 %v113_v37, %v112_v36  ;;  %v115_v40 = vld [vmem:[#allocation2 + $0x38] sm:$0xff]  ;;  %v130_v43 = vld [vmem:[#allocation6 + $0x8] sm:$0xff]  ;;  %v1242_v44 = vld [vmem:[%s1904_s4] ss:$0 sm:$0xff]  ;;  %vm323_vm6 = vcmask 64512   ;;  %v807_v47 = vrot.slane %v1749_v6, 1 }
  0x50   :  { %1335 = vmatprep.mubr.msk.f32.mxu0 %vm1586_vm0, %v1587_v1  ;;  %1334 = vmatpush3.msra.mxu0 %v123_v21  ;;  %v488_v35 = vsel %vm161_vm3, %v487_v32, %v486_v34  ;;  %v1448_v41 = vpack.c.bf16 %v115_v40, %v114_v39  ;;  %v129_v42 = vld [vmem:[#allocation6] sm:$0xff]  ;;  %v1248_v51 = vld [vmem:[%s1902_s2 + $0x1] ss:$0 sm:$0xff]  ;;  %v810_v59 = vrot.slane %v1759_v8, 7  ;;  %v131_v63 = vld [vmem:[#allocation6 + $0x10] sm:$0xff]  ;;  %vm1153_vm7 = vcmask 195584  }
  0x51   :  { %1435 = vmatprep.subr.bf16.mxu0 %v1585_v0  ;;  %v1436_v48 = vpack.c.bf16 %v130_v43, %v129_v42  ;;  %v103_v52 = vld [vmem:[%s1901_s1 + $0x20] sm:$0xff]  ;;  %v104_v53 = vld [vmem:[%s1901_s1 + $0x28] sm:$0xff]  ;;  %v808_v55 = vsel %vm155_vm1, %v807_v47, %v806_v45  ;;  %v116_v4 = vld [vmem:[#allocation2 + $0x40] sm:$0xff]  ;;  %vm1227_vm8 = vcmask 125952   ;;  %vm1133_vm9 = vcmask 388096  }
  0x52   :  { %1434 = vmatpush3.bf16.msra.mxu1 %v1433_v20  ;;  %v1457_v58 = vpack.c.bf16 %v104_v53, %v103_v52  ;;  %v809_v61 = vsel %vm158_vm2, %v1754_v7, %v808_v55  ;;  %v132_v2 = vld [vmem:[#allocation6 + $0x18] sm:$0xff]  ;;  %v117_v5 = vld [vmem:[#allocation2 + $0x48] sm:$0xff]  ;;  %v119_v8 = vld [vmem:[#allocation2 + $0x58] sm:$0xff] }
  0x53   :  { %1441 = vmatprep.subr.bf16.mxu1 %v1585_v0  ;;  %v811_v62 = vsel %vm161_vm3, %v810_v59, %v809_v61  ;;  %v1439_v3 = vpack.c.bf16 %v132_v2, %v131_v63  ;;  %v1460_v6 = vpack.c.bf16 %v117_v5, %v116_v4  ;;  %v118_v7 = vld [vmem:[#allocation2 + $0x50] sm:$0xff]  ;;  %v124_v15 = vld [vmem:[#allocation4 + $0x8] sm:$0xff]  ;;  %v133_v25 = vld [vmem:[#allocation6 + $0x20] sm:$0xff] }
  0x54   :  { %v1463_v9 = vpack.c.bf16 %v119_v8, %v118_v7  ;;  %v1244_v10 = vld [vmem:[%s1906_s6] ss:$0 sm:$0xff]  ;;  %v1250_v16 = vld [vmem:[%s1904_s4 + $0x1] ss:$0 sm:$0xff]  ;;  %v1256_v20 = vld [vmem:[%s1902_s2 + $0x2] ss:$0 sm:$0xff] }
  0x55   :  { %v134_v26 = vld [vmem:[#allocation6 + $0x28] sm:$0xff]  ;;  %v135_v28 = vld [vmem:[#allocation6 + $0x30] sm:$0xff]  ;;  %v1252_v37 = vld [vmem:[%s1906_s6 + $0x1] ss:$0 sm:$0xff] }
  0x56   :  { %v1144_v32 = vld [vmem:[#allocation7 + $0x8] sm:$0xff]  ;;  %v1145_v34 = vld [vmem:[#allocation7 + $0x10] sm:$0xff]  ;;  %v125_v42 = vld [vmem:[#allocation4 + $0x10] sm:$0xff] }
  0x57   :  { %v1258_v43 = vld [vmem:[%s1904_s4 + $0x2] ss:$0 sm:$0xff]  ;;  %v137_v47 = vld [vmem:[#allocation6 + $0x40] sm:$0xff]  ;;  %v1264_v2 = vld [vmem:[%s1910_s10] ss:$0 sm:$0xff] }
  0x58   :  { %v140_v52 = vld [vmem:[#allocation6 + $0x58] sm:$0xff] }
 0x122   :  { %v232_v27 = vpop.f32.mrb[0].mxu0 }
 0x123   :  { %v233_v29 = vadd.f32 %v1240_v23, %v232_v27  ;;  %v1321_v30 = vpop.f32.mrb[1].mxu0  ;;  %v1451_v27 = vpack.c.bf16 %v134_v26, %v133_v25 }
 0x125   :  { %v236_v33 = vmax.f32 %v233_v29, 0.0  ;;  %v136_v29 = vld [vmem:[#allocation6 + $0x38] sm:$0xff] }
 0x126   :  { %v1454_v30 = vpack.c.bf16 %v136_v29, %v135_v28 }
 0x127   :  { %1331 = vmatmul.mubr.msk.f32.vlgmr.msra.gmra.mrb[0].mxu1 %vm243_vm5, %v236_v33 }
 0x128   :  { %1443 = vmatpush3.bf16.msra.mxu1 %v1442_v31  ;;  %1353 = vmatprep.mubr.msk.f32.mxu1 %vm1586_vm0, %v1587_v1  ;;  %v1143_v31 = vld [vmem:[#allocation7] sm:$0xff] }
 0x129   :  { %1444 = vmatprep.subr.bf16.mxu1 %v1585_v0  ;;  %v1472_v33 = vpack.c.bf16 %v1144_v32, %v1143_v31 }
 0x12b   :  { %1354 = vmatmul.mubr.msk.f32.vlgmr.msra.gmra.mrb[2].mxu1 %vm163_vm4, %v488_v35 }
 0x12c   :  { %1364 = vmatprep.mubr.msk.f32.mxu1 %vm1586_vm0, %v1587_v1  ;;  %1446 = vmatpush3.bf16.msra.mxu1 %v1445_v38 }
 0x12d   :  { %1447 = vmatprep.subr.bf16.mxu1 %v1585_v0 }
 0x130   :  { %1449 = vmatpush3.bf16.msra.mxu1 %v1448_v41 }
 0x131   :  { %1456 = vmatprep.subr.bf16.mxu1 %v1585_v0 }
 0x1fa   :  { %v313_v46 = vpop.f32.mrb[0].mxu1 }
 0x1fb   :  { %v1805_v49 = vadd.f32 %v1242_v44, %v313_v46  ;;  %v1332_v50 = vpop.f32.mrb[1].mxu1 }
 0x1fd   :  { %1336 = vmatmul.mubr.msk.f32.vlgmr.msra.gmra.mrb[2].mxu0 %vm323_vm6, %v1805_v49 }
 0x1fe   :  { %v557_v54 = vpop.f32.mrb[2].mxu1  ;;  %1437 = vmatpush3.bf16.msra.mxu0 %v1436_v48  ;;  %1346 = vmatprep.mubr.msk.f32.mxu0 %vm1586_vm0, %v1587_v1  ;;  %v138_v48 = vld [vmem:[#allocation6 + $0x48] sm:$0xff] }
 0x1ff   :  { %v558_v56 = vadd.f32 %v1248_v51, %v557_v54  ;;  %v1355_v57 = vpop.f32.mrb[3].mxu1  ;;  %1438 = vmatprep.subr.bf16.mxu0 %v1585_v0  ;;  %v1466_v50 = vpack.c.bf16 %v138_v48, %v137_v47  ;;  %v139_v51 = vld [vmem:[#allocation6 + $0x50] sm:$0xff] }
 0x200   :  { %v1469_v53 = vpack.c.bf16 %v140_v52, %v139_v51 }
 0x201   :  { %v561_v60 = vmax.f32 %v558_v56, 0.0 }
 0x202   :  { %1440 = vmatpush3.bf16.msra.mxu0 %v1439_v3 }
 0x203   :  { %1365 = vmatmul.mubr.msk.f32.vlgmr.msra.gmra.mrb[4].mxu1 %vm243_vm5, %v561_v60  ;;  %1367 = vmatprep.subr.mxu0 %v1587_v1  ;;  %v1260_v60 = vld [vmem:[%s1906_s6 + $0x2] ss:$0 sm:$0xff] }
 0x204   :  { %1458 = vmatpush3.bf16.msra.mxu1 %v1457_v58  ;;  %1387 = vmatprep.mubr.msk.f32.mxu1 %vm1586_vm0, %v1587_v1 }
 0x205   :  { %1459 = vmatprep.subr.bf16.mxu1 %v1585_v0 }
 0x207   :  { %1388 = vmatmul.mubr.msk.f32.vlgmr.msra.gmra.mrb[6].mxu1 %vm163_vm4, %v811_v62 }
 0x208   :  { %1398 = vmatprep.mubr.msk.f32.mxu1 %vm1586_vm0, %v1587_v1  ;;  %1461 = vmatpush3.bf16.msra.mxu1 %v1460_v6  ;;  %v1262_v6 = vld [vmem:[%s1908_s8 + $0x2] ss:$0 sm:$0xff] }
 0x209   :  { %1462 = vmatprep.subr.bf16.mxu1 %v1585_v0 }
 0x20c   :  { %1464 = vmatpush3.bf16.msra.mxu1 %v1463_v9 }
 0x20d   :  { %1471 = vmatprep.subr.bf16.mxu1 %v1585_v0 }
 0x2d0   :  { %v393_v11 = vpop.f32.mrb[2].mxu0 }
 0x2d1   :  { %v394_v12 = vadd.f32 %v1244_v10, %v393_v11  ;;  %v1337_v13 = vpop.f32.mrb[3].mxu0  ;;  %v1246_v10 = vld [vmem:[%s1908_s8] ss:$0 sm:$0xff] }
 0x2d3   :  { %v397_v14 = vmax.f32 %v394_v12, 0.0 }
 0x2d5   :  { %1347 = vmatmul.mubr.msk.f32.vlgmr.msra.gmra.mrb[4].mxu0 %vm243_vm5, %v397_v14 }
 0x2d6   :  { %1368 = vmatpush3.msra.mxu0 %v124_v15  ;;  %v637_v17 = vpop.f32.mrb[4].mxu1  ;;  %1369 = vmatprep.mubr.msk.f32.mxu0 %vm1586_vm0, %v1587_v1 }
 0x2d7   :  { %v638_v18 = vadd.f32 %v1250_v16, %v637_v17  ;;  %v1366_v19 = vpop.f32.mrb[5].mxu1  ;;  %1450 = vmatprep.subr.bf16.mxu0 %v1585_v0 }
 0x2d9   :  { %1135 = vrot.lane.b32.xlu0 %v638_v18, %s1582_s16  ;;  %1370 = vmatmul.mubr.msk.f32.vlgmr.msra.gmra.mrb[6].mxu0 %vm323_vm6, %v638_v18 }
 0x2da   :  { %v880_v21 = vpop.f32.mrb[6].mxu1  ;;  %1380 = vmatprep.mubr.msk.f32.mxu0 %vm1586_vm0, %v1587_v1  ;;  %1452 = vmatpush3.bf16.msra.mxu0 %v1451_v27 }
 0x2db   :  { %v881_v22 = vadd.f32 %v1256_v20, %v880_v21  ;;  %v1389_v23 = vpop.f32.mrb[7].mxu1  ;;  %1453 = vmatprep.subr.bf16.mxu0 %v1585_v0 }
 0x2dd   :  { %v884_v24 = vmax.f32 %v881_v22, 0.0 }
 0x2de   :  { %1455 = vmatpush3.bf16.msra.mxu0 %v1454_v30 }
 0x2df   :  { %1399 = vmatmul.mubr.msk.f32.vlgmr.msra.gmra.mrb[8].mxu1 %vm243_vm5, %v884_v24  ;;  %1401 = vmatprep.subr.mxu0 %v1587_v1 }
 0x2e0   :  { %1423 = vmatprep.mubr.msk.f32.mxu1 %vm1586_vm0, %v1587_v1  ;;  %1473 = vmatpush3.bf16.msra.mxu1 %v1472_v33 }
 0x2e1   :  { %1421 = vmatprep.subr.mxu1 %v1587_v1 }
 0x2e4   :  { %1422 = vmatpush3.msra.mxu1 %v1145_v34 }
 0x34b   :  { %v1136_v54 = vpop.permute.xlu0 %1135 }
 0x34c   :  { %v1141_v55 = vsel %vm323_vm6, %v1805_v49, %v1136_v54 }
 0x3a8   :  { %v473_v35 = vpop.f32.mrb[4].mxu0 }
 0x3a9   :  { %v1348_v36 = vpop.f32.mrb[5].mxu0  ;;  %v474_v12 = vadd.f32 %v1246_v10, %v473_v35 }
 0x3ac   :  { %v716_v38 = vpop.f32.mrb[6].mxu0 }
 0x3ad   :  { %v717_v39 = vadd.f32 %v1252_v37, %v716_v38  ;;  %v1371_v40 = vpop.f32.mrb[7].mxu0 }
 0x3af   :  { %v720_v41 = vmax.f32 %v717_v39, 0.0 }
 0x3b1   :  { %1381 = vmatmul.mubr.msk.f32.vlgmr.msra.gmra.mrb[8].mxu0 %vm243_vm5, %v720_v41 }
 0x3b2   :  { %1402 = vmatpush3.msra.mxu0 %v125_v42  ;;  %v960_v44 = vpop.f32.mrb[8].mxu1  ;;  %1403 = vmatprep.mubr.msk.f32.mxu0 %vm1586_vm0, %v1587_v1 }
 0x3b3   :  { %v961_v45 = vadd.f32 %v1258_v43, %v960_v44  ;;  %v1400_v46 = vpop.f32.mrb[9].mxu1  ;;  %1465 = vmatprep.subr.bf16.mxu0 %v1585_v0 }
 0x3b5   :  { %1138 = vrot.lane.b32.xlu0 %v961_v45, %s1588_s27  ;;  %1404 = vmatmul.mubr.msk.f32.vlgmr.msra.gmra.mrb[10].mxu0 %vm323_vm6, %v961_v45 }
 0x3b6   :  { %1414 = vmatprep.mubr.msk.f32.mxu0 %vm1586_vm0, %v1587_v1  ;;  %1467 = vmatpush3.bf16.msra.mxu0 %v1466_v50  ;;  %v1254_v1 = vld [vmem:[%s1908_s8 + $0x1] ss:$0 sm:$0xff] }
 0x3b7   :  { %1468 = vmatprep.subr.bf16.mxu0 %v1585_v0 }
 0x3ba   :  { %1470 = vmatpush3.bf16.msra.mxu0 %v1469_v53 }
 0x427   :  { %v1139_v56 = vpop.permute.xlu0 %1138 }
 0x428   :  { %v1142_v57 = vsel %vm163_vm4, %v1141_v55, %v1139_v56 }
 0x429   :  { %1424 = vmatmul.mubr.msk.f32.vlgmr.msra.gmra.mrb[10].mxu1 %vm1153_vm7, %v1142_v57 }
 0x484   :  { %v796_v58 = vpop.f32.mrb[8].mxu0 }
 0x485   :  { %v797_v59 = vadd.f32 %v1254_v1, %v796_v58  ;;  %v1382_v0 = vpop.f32.mrb[9].mxu0 }
 0x487   :  { %1124 = vrot.lane.b32.xlu1 %v797_v59, %s1588_s27 }
 0x488   :  { %v1039_v61 = vpop.f32.mrb[10].mxu0 }
 0x489   :  { %v1040_v62 = vadd.f32 %v1260_v60, %v1039_v61  ;;  %v1405_v63 = vpop.f32.mrb[11].mxu0 }
 0x48b   :  { %v1043_v49 = vmax.f32 %v1040_v62, 0.0 }
 0x48d   :  { %1415 = vmatmul.mubr.msk.f32.vlgmr.msra.gmra.mrb[12].mxu0 %vm243_vm5, %v1043_v49 }
 0x4f9   :  { %v1125_v11 = vpop.permute.xlu1 %1124 }
 0x4fa   :  { %v1131_v13 = vsel %vm163_vm4, %v474_v12, %v1125_v11 }
 0x4fc   :  { %v1223_v3 = vpop.f32.mrb[10].mxu1 }
 0x4fd   :  { %v1224_v4 = vadd.f32 %v1264_v2, %v1223_v3  ;;  %v1425_v5 = vpop.f32.mrb[11].mxu1 }
 0x4ff   :  { %1228 = vst.msk [vmem:[%s1912_s12] sm:$0xf] %vm1227_vm8, %v1224_v4 }
 0x560   :  { %v1119_v7 = vpop.f32.mrb[12].mxu0 }
 0x561   :  { %v1120_v8 = vadd.f32 %v1262_v6, %v1119_v7  ;;  %v1416_v9 = vpop.f32.mrb[13].mxu0 }
 0x563   :  { %1128 = vrot.lane.b32.xlu1 %v1120_v8, %s1589_s7 }
 0x5d5   :  { %v1129_v14 = vpop.permute.xlu1 %1128 }
 0x5d6   :  { %v1132_v15 = vsel %vm243_vm5, %v1131_v13, %v1129_v14 }
 0x5d7   :  { %1134 = vst.msk [vmem:[%s1911_s11] sm:$0xf] %vm1133_vm9, %v1132_v15 }
 0x5d8   :  { %1237 = vsyncpa [#allocation3], 1 }
 0x5d9   :  { %1238 = vsyncpa [#allocation5], 1 }
 0x5da   :  { %1239 = vsyncpa [#allocation8], 1 }

</bundles_post_ra>
